<compile_context>
chip_gen: v5e
topology: v5e:2x2
jax: 0.10.0
libtpu: 0.0.40
codegen_flags: <defaults>
</compile_context>

<pallas_src>
import functools
import math

import jax
import jax.numpy as jnp
from jax.experimental import pallas as pl
from jax.experimental.pallas import tpu as pltpu

EPS = 1e-5       # nn.LayerNorm default
NEG_INF = -1e30  # additive mask value for padded kv positions


def _round_up(x, m):
    return (x + m - 1) // m * m


def _masked_layernorm(x, gamma, beta, d_orig):
    """LayerNorm over the last axis, ignoring padded feature lanes >= d_orig.

    x: (T, Dp) f32 with padded lanes guaranteed zero; gamma/beta: (1, Dp) f32.
    Padded output lanes are forced to zero so downstream contractions over the
    full padded feature axis remain exact.
    """
    d_pad = x.shape[-1]
    if d_pad == d_orig:
        mu = jnp.mean(x, axis=-1, keepdims=True)
        diff = x - mu
        var = jnp.mean(diff * diff, axis=-1, keepdims=True)
        return diff * jax.lax.rsqrt(var + EPS) * gamma + beta
    lane = jax.lax.broadcasted_iota(jnp.int32, x.shape, 1)
    mask = lane < d_orig
    inv_d = 1.0 / float(d_orig)
    mu = jnp.sum(x, axis=-1, keepdims=True) * inv_d          # padded lanes are zero
    diff = jnp.where(mask, x - mu, 0.0)
    var = jnp.sum(diff * diff, axis=-1, keepdims=True) * inv_d
    y = diff * jax.lax.rsqrt(var + EPS) * gamma + beta
    return jnp.where(mask, y, 0.0)


# ---------------------------------------------------------------------------
# Standalone LayerNorm pass: pre-normalizes K and V once, emitting the matmul
# compute dtype so the flash loop streams bf16 instead of f32.
# ---------------------------------------------------------------------------
def _layernorm_kernel(x_ref, gb_ref, o_ref, *, d_orig):
    gb = gb_ref[...].astype(jnp.float32)            # (2, Dp): gamma, beta
    y = _masked_layernorm(x_ref[0].astype(jnp.float32), gb[0:1], gb[1:2], d_orig)
    # NOTE: rows beyond the original sequence length come out as `beta`; that is
    # benign because padded kv columns are masked to NEG_INF in the flash kernel.
    o_ref[0] = y.astype(o_ref.dtype)


def _pallas_layernorm(x_padded, gamma, beta, d_orig, *, block_s, out_dtype):
    """x_padded: (B, S_pad, Dp) with S_pad % block_s == 0, padded lanes zero."""
    B, s_pad, d_pad = x_padded.shape
    assert s_pad % block_s == 0
    gb = jnp.stack([gamma.reshape(-1), beta.reshape(-1)], axis=0)
    gb = jnp.pad(gb, ((0, 0), (0, d_pad - gb.shape[1]))).astype(jnp.float32)
    return pl.pallas_call(
        functools.partial(_layernorm_kernel, d_orig=d_orig),
        out_shape=jax.ShapeDtypeStruct((B, s_pad, d_pad), out_dtype),
        grid_spec=pltpu.PrefetchScalarGridSpec(
            num_scalar_prefetch=0,
            grid=(B, s_pad // block_s),
            in_specs=[
                pl.BlockSpec((1, block_s, d_pad), lambda b, si: (b, si, 0)),
                pl.BlockSpec((2, d_pad), lambda b, si: (0, 0)),
            ],
            out_specs=pl.BlockSpec((1, block_s, d_pad), lambda b, si: (b, si, 0))),
        compiler_params=pltpu.CompilerParams(
            dimension_semantics=("parallel", "parallel")),
    )(x_padded, gb)


# ---------------------------------------------------------------------------
# Flash-tiled attention with the Q LayerNorm fused (hoisted to per-q-tile scratch).
# ---------------------------------------------------------------------------
def _prenorm_flash_kernel(q_ref, k_ref, v_ref, gbq_ref, o_ref,
                          qn_sc, m_sc, l_sc, acc_sc,
                          *, d_orig, sk_orig, block_k, precision):
    kv_i = pl.program_id(2)

    @pl.when(kv_i == 0)
    def _():
        # Q LayerNorm (1/sqrt(D) scale folded into gamma/beta wrapper-side),
        # hoisted out of the kv loop: computed once per q tile into scratch.
        gbq = gbq_ref[...].astype(jnp.float32)
        qn = _masked_layernorm(q_ref[0].astype(jnp.float32),
                               gbq[0:1], gbq[1:2], d_orig)
        qn_sc[...] = qn.astype(qn_sc.dtype)
        m_sc[...] = jnp.full_like(m_sc, -jnp.inf)
        l_sc[...] = jnp.zeros_like(l_sc)
        acc_sc[...] = jnp.zeros_like(acc_sc)

    q = qn_sc[...]        # (tq, Dp) compute dtype, LayerNorm'd + scaled
    k = k_ref[0]          # (tk, Dp) compute dtype, pre-normalized
    v = v_ref[0]          # (tk, Dp) compute dtype, pre-normalized

    # Scores: contract the feature axes directly (no explicit transpose).
    s = jax.lax.dot_general(
        q, k, dimension_numbers=(((1,), (1,)), ((), ())),
        preferred_element_type=jnp.float32, precision=precision)  # (tq, tk) f32

    if sk_orig % block_k != 0:
        # Only when ragged padding exists at trace time; aligned shapes pay nothing.
        col = kv_i * block_k + jax.lax.broadcasted_iota(jnp.int32, s.shape, 1)
        s = jnp.where(col < sk_orig, s, NEG_INF)
    # TODO(synk): the module forwards an optional `mask` to fn; an additive mask
    # block would be applied to `s` here before the max/exp.

    # Online softmax (statistics and accumulation in f32).
    m_prev = m_sc[...]
    m_new = jnp.maximum(m_prev, jnp.max(s, axis=-1, keepdims=True))
    alpha = jnp.exp(m_prev - m_new)
    p = jnp.exp(s - m_new)
    l_sc[...] = alpha * l_sc[...] + jnp.sum(p, axis=-1, keepdims=True)
    acc_sc[...] = alpha * acc_sc[...] + jnp.dot(
        p.astype(v.dtype), v, preferred_element_type=jnp.float32,
        precision=precision)
    m_sc[...] = m_new

    @pl.when(kv_i == pl.num_programs(2) - 1)
    def _():
        # Exact division: runs once per q tile, so skip the approx reciprocal.
        o_ref[0] = (acc_sc[...] / l_sc[...]).astype(o_ref.dtype)


def prenorm_attention(q, k, v, params, mask=None, *,
                      block_q=256, block_k=512,
                      compute_dtype=jnp.bfloat16):
    """PreNormAttention forward.

    q: (B, Sq, D); k, v: (B, Sk, D); params: dict of (1, D) gamma/beta arrays
    for the q / k / v LayerNorms.
    """
    assert mask is None  # TODO(synk): attention mask not wired through the kernel.
    B, Sq, D = q.shape
    Bk, Sk, Dk = k.shape
    assert (B, D) == (Bk, Dk) and v.shape == k.shape

    d_pad = _round_up(D, 128)                   # lane-dense feature axis
    tq = min(block_q, _round_up(Sq, 16))
    tk = min(block_k, _round_up(Sk, 16))
    sq_pad = _round_up(Sq, tq)
    sk_pad = _round_up(Sk, tk)

    qp = jnp.pad(q, ((0, 0), (0, sq_pad - Sq), (0, d_pad - D)))
    kp = jnp.pad(k, ((0, 0), (0, sk_pad - Sk), (0, d_pad - D)))
    vp = jnp.pad(v, ((0, 0), (0, sk_pad - Sk), (0, d_pad - D)))

    # Pre-normalize K and V once (Pallas LN pass) in the compute dtype: removes
    # all K/V LayerNorm work from the flash inner loop and halves the K/V HBM
    # traffic that the flash loop re-streams Sq/tq times.
    kn = _pallas_layernorm(kp, params["gk"], params["bk"], D,
                           block_s=tk, out_dtype=compute_dtype)
    vn = _pallas_layernorm(vp, params["gv"], params["bv"], D,
                           block_s=tk, out_dtype=compute_dtype)

    # Q LayerNorm stays fused in the flash kernel; fold the 1/sqrt(D) softmax
    # scale into gamma_q / beta_q so the kernel applies it for free.
    scale = 1.0 / math.sqrt(D)
    gbq = jnp.stack([params["gq"].reshape(-1) * scale,
                     params["bq"].reshape(-1) * scale], axis=0)
    gbq = jnp.pad(gbq, ((0, 0), (0, d_pad - D))).astype(jnp.float32)

    # Exact f32 matmuls when validating with a float32 compute path.
    precision = (jax.lax.Precision.HIGHEST
                 if jnp.dtype(compute_dtype) == jnp.float32 else None)

    kernel = functools.partial(
        _prenorm_flash_kernel,
        d_orig=D, sk_orig=Sk, block_k=tk, precision=precision)

    out = pl.pallas_call(
        kernel,
        out_shape=jax.ShapeDtypeStruct((B, sq_pad, d_pad), q.dtype),
        grid_spec=pltpu.PrefetchScalarGridSpec(
            num_scalar_prefetch=0,
            grid=(B, sq_pad // tq, sk_pad // tk),
            in_specs=[
                pl.BlockSpec((1, tq, d_pad), lambda b, qi, ki: (b, qi, 0)),
                pl.BlockSpec((1, tk, d_pad), lambda b, qi, ki: (b, ki, 0)),
                pl.BlockSpec((1, tk, d_pad), lambda b, qi, ki: (b, ki, 0)),
                pl.BlockSpec((2, d_pad), lambda b, qi, ki: (0, 0)),
            ],
            out_specs=pl.BlockSpec((1, tq, d_pad), lambda b, qi, ki: (b, qi, 0)),
            scratch_shapes=[
                pltpu.VMEM((tq, d_pad), compute_dtype),   # normalized q tile
                pltpu.VMEM((tq, 1), jnp.float32),         # running max
                pltpu.VMEM((tq, 1), jnp.float32),         # running sum
                pltpu.VMEM((tq, d_pad), jnp.float32),     # output accumulator
            ]),
        compiler_params=pltpu.CompilerParams(
            dimension_semantics=("parallel", "parallel", "arbitrary"),
            vmem_limit_bytes=32 * 1024 * 1024),
    )(qp, kn, vn, gbq)

    return out[:, :Sq, :D]


def prenorm_attention_ref(q, k, v, params):
    def ln(x, g, b):
        mu = jnp.mean(x, axis=-1, keepdims=True)
        var = jnp.mean((x - mu) ** 2, axis=-1, keepdims=True)
        return (x - mu) / jnp.sqrt(var + EPS) * g + b

    q = ln(q, params["gq"], params["bq"])
    k = ln(k, params["gk"], params["bk"])
    v = ln(v, params["gv"], params["bv"])
    s = jnp.einsum("bqd,bkd->bqk", q, k,
                   precision=jax.lax.Precision.HIGHEST)
    s = s / jnp.sqrt(jnp.float32(q.shape[-1]))
    p = jax.nn.softmax(s, axis=-1)
    return jnp.einsum("bqk,bkd->bqd", p, v,
                      precision=jax.lax.Precision.HIGHEST)


if __name__ == "__main__":
    # Small shapes that exercise lane padding (D=32 -> 128), ragged kv padding
    # (Sk=24 -> 32 with tk=16) and multiple q / kv tiles with online softmax,
    # plus >= 2 parallel grid slices.
    B, Sq, Sk, D = 2, 32, 24, 32
    key = jax.random.PRNGKey(0)
    kq, kk, kv, kp = jax.random.split(key, 4)

    q = jax.random.normal(kq, (B, Sq, D), dtype=jnp.float32)
    k = jax.random.normal(kk, (B, Sk, D), dtype=jnp.float32)
    v = jax.random.normal(kv, (B, Sk, D), dtype=jnp.float32)

    pk = jax.random.split(kp, 6)
    params = {
        "gq": 1.0 + 0.1 * jax.random.normal(pk[0], (1, D), jnp.float32),
        "bq": 0.1 * jax.random.normal(pk[1], (1, D), jnp.float32),
        "gk": 1.0 + 0.1 * jax.random.normal(pk[2], (1, D), jnp.float32),
        "bk": 0.1 * jax.random.normal(pk[3], (1, D), jnp.float32),
        "gv": 1.0 + 0.1 * jax.random.normal(pk[4], (1, D), jnp.float32),
        "bv": 0.1 * jax.random.normal(pk[5], (1, D), jnp.float32),
    }

    ref = jax.block_until_ready(prenorm_attention_ref(q, k, v, params))

    # f32 compute path: validates tiling / online softmax / masking structure
    # against the high-precision reference.
    out_f32 = prenorm_attention(q, k, v, params, block_q=16, block_k=16,
                                compute_dtype=jnp.float32)
    out_f32 = jax.block_until_ready(out_f32)
    assert out_f32.shape == (B, Sq, D)
    err32 = float(jnp.max(jnp.abs(out_f32 - ref)))
    assert jnp.allclose(out_f32, ref, atol=1e-2, rtol=1e-2), \
        f"f32 path max abs err {err32}"

    # bf16 compute path (production default): bf16 MXU operands, f32 accumulation;
    # tolerance covers the bf16 operand quantization.
    out_bf16 = prenorm_attention(q, k, v, params, block_q=16, block_k=16)
    out_bf16 = jax.block_until_ready(out_bf16)
    assert out_bf16.shape == (B, Sq, D)
    err16 = float(jnp.max(jnp.abs(out_bf16 - ref)))
    assert jnp.allclose(out_bf16, ref, atol=5e-2, rtol=5e-2), \
        f"bf16 path max abs err {err16}"

    print("KERNEL_OK")
</pallas_src>

<mosaic_0001>
module attributes {stable_mosaic.version = 11 : i64} {
  func.func @_layernorm_kernel(%arg0: i32, %arg1: i32, %arg2: memref<1x16x128xf32, #tpu.memory_space<vmem>>, %arg3: memref<2x128xf32, #tpu.memory_space<vmem>>, %arg4: memref<1x16x128xf32, #tpu.memory_space<vmem>>) attributes {dimension_semantics = [#tpu.dimension_semantics<parallel>, #tpu.dimension_semantics<parallel>], iteration_bounds = array<i64: 2, 2>, scalar_prefetch = 0 : i64, scratch_operands = 0 : i64, tpu.core_type = #tpu.core_type<tc>, window_params = [{transform_indices = @transform_0, window_bounds = array<i64: 1, 16, 128>}, {pipeline_mode = #tpu.pipeline_mode<synchronous>, transform_indices = @transform_1, window_bounds = array<i64: 2, 128>}, {transform_indices = @transform_2, window_bounds = array<i64: 1, 16, 128>}]} {
    %c0 = arith.constant 0 : index
    %c0_0 = arith.constant 0 : index
    %0 = vector.load %arg3[%c0, %c0_0] : memref<2x128xf32, #tpu.memory_space<vmem>>, vector<2x128xf32>
    %c0_1 = arith.constant 0 : index
    %c0_2 = arith.constant 0 : index
    %c0_3 = arith.constant 0 : index
    %1 = vector.load %arg2[%c0_1, %c0_2, %c0_3] : memref<1x16x128xf32, #tpu.memory_space<vmem>>, vector<1x16x128xf32>
    %2 = vector.shape_cast %1 : vector<1x16x128xf32> to vector<16x128xf32>
    %3 = vector.extract_strided_slice %0 {offsets = [0, 0], sizes = [1, 128], strides = [1, 1]} : vector<2x128xf32> to vector<1x128xf32>
    %4 = vector.extract_strided_slice %0 {offsets = [1, 0], sizes = [1, 128], strides = [1, 1]} : vector<2x128xf32> to vector<1x128xf32>
    %5 = tpu.iota {dimensions = array<i32: 1>} : vector<16x128xi32>
    %c32_i32 = arith.constant 32 : i32
    %6 = vector.broadcast %c32_i32 : i32 to vector<16x128xi32>
    %7 = arith.cmpi slt, %5, %6 : vector<16x128xi32>
    %cst = arith.constant dense<0.000000e+00> : vector<16xf32>
    %8 = vector.multi_reduction <add>, %2, %cst [1] : vector<16x128xf32> to vector<16xf32>
    %9 = vector.shape_cast %8 : vector<16xf32> to vector<16x1xf32>
    %cst_4 = arith.constant 3.125000e-02 : f32
    %10 = vector.broadcast %cst_4 : f32 to vector<16x1xf32>
    %11 = arith.mulf %9, %10 : vector<16x1xf32>
    %12 = vector.broadcast %11 : vector<16x1xf32> to vector<16x128xf32>
    %13 = arith.subf %2, %12 : vector<16x128xf32>
    %cst_5 = arith.constant 0.000000e+00 : f32
    %14 = vector.broadcast %cst_5 : f32 to vector<16x128xf32>
    %15 = arith.select %7, %13, %14 : vector<16x128xi1>, vector<16x128xf32>
    %16 = arith.mulf %15, %15 : vector<16x128xf32>
    %cst_6 = arith.constant dense<0.000000e+00> : vector<16xf32>
    %17 = vector.multi_reduction <add>, %16, %cst_6 [1] : vector<16x128xf32> to vector<16xf32>
    %18 = vector.shape_cast %17 : vector<16xf32> to vector<16x1xf32>
    %cst_7 = arith.constant 3.125000e-02 : f32
    %19 = vector.broadcast %cst_7 : f32 to vector<16x1xf32>
    %20 = arith.mulf %18, %19 : vector<16x1xf32>
    %cst_8 = arith.constant 9.99999974E-6 : f32
    %21 = vector.broadcast %cst_8 : f32 to vector<16x1xf32>
    %22 = arith.addf %20, %21 : vector<16x1xf32>
    %23 = math.rsqrt %22 : vector<16x1xf32>
    %24 = vector.broadcast %23 : vector<16x1xf32> to vector<16x128xf32>
    %25 = arith.mulf %15, %24 : vector<16x128xf32>
    %26 = vector.broadcast %3 : vector<1x128xf32> to vector<16x128xf32>
    %27 = arith.mulf %25, %26 : vector<16x128xf32>
    %28 = vector.broadcast %4 : vector<1x128xf32> to vector<16x128xf32>
    %29 = arith.addf %27, %28 : vector<16x128xf32>
    %cst_9 = arith.constant 0.000000e+00 : f32
    %30 = vector.broadcast %cst_9 : f32 to vector<16x128xf32>
    %31 = arith.select %7, %29, %30 : vector<16x128xi1>, vector<16x128xf32>
    %c0_10 = arith.constant 0 : index
    %c0_11 = arith.constant 0 : index
    %c0_12 = arith.constant 0 : index
    %32 = vector.load %arg4[%c0_10, %c0_11, %c0_12] : memref<1x16x128xf32, #tpu.memory_space<vmem>>, vector<1x16x128xf32>
    %33 = vector.shape_cast %32 : vector<1x16x128xf32> to vector<16x128xf32>
    %34 = vector.shape_cast %31 : vector<16x128xf32> to vector<1x16x128xf32>
    tpu.vector_store %arg4[%c0_10, %c0_11, %c0_12], %34 {strides = array<i32>} : memref<1x16x128xf32, #tpu.memory_space<vmem>>, vector<1x16x128xf32>,
    return
  }
  func.func @transform_0(%arg0: i32, %arg1: i32) -> (i32, i32, i32) {
    %c0_i32 = arith.constant 0 : i32
    %c0_i32_0 = arith.constant 0 : i32
    return %arg0, %arg1, %c0_i32 : i32, i32, i32
  }
  func.func @transform_1(%arg0: i32, %arg1: i32) -> (i32, i32) {
    %c0_i32 = arith.constant 0 : i32
    %c0_i32_0 = arith.constant 0 : i32
    %c0_i32_1 = arith.constant 0 : i32
    return %c0_i32, %c0_i32_0 : i32, i32
  }
  func.func @transform_2(%arg0: i32, %arg1: i32) -> (i32, i32, i32) {
    %c0_i32 = arith.constant 0 : i32
    %c0_i32_0 = arith.constant 0 : i32
    return %arg0, %arg1, %c0_i32 : i32, i32, i32
  }
}

</mosaic_0001>

<bundles_post_ra>
// kernel: tpu_custom_call.1
= control target key start
LH: loop header
LB: loop body
LE: loop exit
PB: predicated region body
PF: predicated region fallthrough
CT: control target
= control target key end

     0   :  { %s863_s0 = inlined_call_operand.hbm [shape: f32[2,32,128], index: 0, kind: input, shape index: {}]   ;;  %s864_s1 = inlined_call_operand.hbm [shape: f32[2,128], index: 1, kind: input, shape index: {}]   ;;  %s865_s2 = inlined_call_operand.hbm [shape: f32[2,32,128], index: 2, kind: output, shape index: {}]  }
   0x1   :  { %875 = sst [smem:[#allocation17_spill]] %s864_s1 }
   0x2   :  { %876 = sst [smem:[#allocation18_spill]] %s865_s2 }
   0x3   :  { %7 = vsyncpa [#allocation3], 0 }
   0x4   :  { %9 = vsyncpa [#allocation3 + $0x1], 0 }
   0x5   :  { %10 = vsyncpa [#allocation6], 0 }
   0x6   :  { %11 = vsyncpa [#allocation4], 0 }
   0x7   :  { %13 = vsyncpa [#allocation4 + $0x1], 0  ;;  %s675_s9 = smov 0   ;;  %s677_s10 = smov 0  }
   0x8   :  { %s679_s11 = smov 0   ;;  %s681_s12 = smov 0  }
   0x9   :  { %s683_s13 = smov 0   ;;  %s685_s14 = smov 0  }
   0xa   :  { %s687_s15 = smov 0   ;;  %s689_s16 = smov 0  }
   0xb LB: > { %877 = sst [smem:[#allocation11_spill]] %s625_s9  ;;  %s375_s17 = sadd.s32 4294967295, %s653_s16   ;;  %s653_s16 = sphi %s689_s16, %s19_s16   ;;  %s649_s15 = sphi %s687_s15, %s904_s15   ;;  %s645_s14 = sphi %s685_s14, %s899_s14   ;;  %s641_s13 = sphi %s683_s13, %s903_s13   ;;  %s637_s12 = sphi %s681_s12, %s898_s12   ;;  %s633_s11 = sphi %s679_s11, %s902_s11   ;;  %s629_s10 = sphi %s677_s10, %s901_s10   ;;  %s625_s9 = sphi %s675_s9, %s900_s9  }
   0xc   : > { %878 = sst [smem:[#allocation12_spill]] %s645_s14  ;;  %s376_s18 = sadd.s32 4294967294, %s653_s16  }
   0xd   : > { %879 = sst [smem:[#allocation13_spill]] %s653_s16  ;;  %p47_p0 = scmp.ne.s32.totalorder %s633_s11, %s629_s10 }
   0xe   : > { %p48_p1 = scmp.eq.s32.totalorder %s653_s16, 0  ;;  %p53_p2 = scmp.ne.s32.totalorder %s629_s10, %s625_s9 }
   0xf   : > { %p723_p3 = scmp.eq.s32.totalorder %s375_s17, 0  ;;  %p100_p4 = scmp.eq.s32.totalorder %s375_s17, 3 }
  0x10   : > { %p727_p5 = por %p48_p1, %p47_p0  ;;  %p106_p6 = scmp.eq.s32.totalorder %s376_s18, 3 }
  0x11   : > { %p733_p7 = por %p723_p3, %p53_p2  ;;  %p737_p8 = por %p100_p4, %p47_p0 }
  0x12   : > { %p741_p9 = por %p106_p6, %p53_p2  ;;  %p377_p10 = scmp.ge.s32.totalorder %s653_s16, 1 }
  0x13   : > { %s883_s23 = scalar_select %p737_p8, 1, 0 }
  0x14   : > { %s885_s24 = scalar_select %p741_p9, 1, 0 }
  0x15   : > { %884 = sst [smem:[#allocation14_spill]] %s883_s23  ;;  %p113_p11 = scmp.lt.s32.totalorder %s653_s16, 5 }
  0x16   : > { %886 = sst [smem:[#allocation15_spill]] %s885_s24  ;;  %s655_s29 = smov [#allocation5]  }
  0x17   : > { %s887_s1 = sld [smem:[#allocation17_spill]]  ;;  %p750_p12 = pnand %p377_p10, %p113_p11 }
  0x18   : > { %s127_s30 = sshll.u32 %s655_s29, 4  ;;  %p415_p0 = scmp.lt.s32.totalorder %s653_s16, 4  ;;  %s128_s30 = int_to_ptr.vmem [resolvable:$true] %s127_s30 }
  0x19   : > { %p402_p13 = pneg %p750_p12  ;;  %s28_s4 = sadd.s32 1, %s645_s14 }
  0x1a   : > { %p761_p2 = pnand %p415_p0, %p727_p5  ;;  %p29_p4 = scmp.ge.s32.totalorder %s28_s4, 2 }
  0x1b   : > { %p403_p1 = pnand %p402_p13, %p723_p3  ;;  %s31_s5 = sadd.s32 1, %s649_s15 }
  0x1c   : > { %s138_s6 = sand.u32 1, %s633_s11   ;;  %s381_s7 = sshll.u32 %s645_s14, 1 }
  0x1d   : > { %s125_s27 = sshll.u32 %s887_s1, 4  ;;  %s906_s4 = smov (%p29_p4, %s28_s4), 0  ;;  %s126_s27 = int_to_ptr.hbm [resolvable:$true] %s125_s27 }
  0x1e   : > { %405 = dma.hbm_to_vmem [thread:$0]  (!%p403_p1), %s126_s27, 32, %s128_s30, [#allocation6]  }
  0x1f   : > { %890 = sst [smem:[#allocation16_spill]] %s906_s4  ;;  %s908_s5 = smov (!%p29_p4, %s31_s5), %s649_s15 }
  0x20   : > { %s36_s8 = ssub.s32 %s645_s14, %s906_s4  ;;  %p33_p6 = scmp.ge.s32.totalorder %s908_s5, 2 }
  0x21   : > { %s380_s17 = sshll.u32 %s138_s6, 4  ;;  %s382_s18 = sshll.u32 %s649_s15, 2 }
  0x22   : > { %s910_s5 = smov (%p33_p6, %s908_s5), 0  ;;  %s147_s21 = sadd.s32 %s382_s18, %s381_s7 }
  0x23   : > { %s142_s25 = scalar_lea.vmem [#allocation2], %s380_s17  ;;  %s35_s27 = ssub.s32 %s649_s15, %s910_s5 }
  0x24   : > { %s152_s26 = sshll.u32 %s142_s25, 4  ;;  %s383_s29 = sshll.u32 %s147_s21, 3  ;;  %s153_s26 = int_to_ptr.vmem [resolvable:$true] %s152_s26 }
  0x25   : > { %s37_s30 = sor.u32 %s36_s8, %s35_s27  ;;  %s149_s24 = scalar_lea.hbm %s863_s0, %s383_s29 }
  0x26   : > { %p38_p5 = scmp.eq.s32.totalorder %s37_s30, 0  ;;  %s150_s4 = sshll.u32 %s149_s24, 4  ;;  %s151_s4 = int_to_ptr.hbm [resolvable:$true] %s150_s4 }
  0x27   : > { %s891_s14 = sadd.s32 1, %s633_s11  ;;  %s139_s16 = scalar_lea.sflag [#allocation3], %s138_s6 }
  0x28   : > { %s785_s9 = scalar_select %p38_p5, %s633_s11, %s891_s14  }
  0x29   : > { %s656_s23 = smov 128   ;;  %s657_s2 = smov 8  }
  0x2a   : > { %409 = dma.hbm_to_vmem [thread:$0]  (!%p761_p2), %s151_s4, 256, %s153_s26, %s139_s16, %s656_s23, %s656_s23, %s657_s2  }
  0x2b   : > { %164 = sbr.rel (%p750_p12) target bundleno = 332 (0x14c), region = 28  ;;  %s792_s7 = sand.u32 (!%p750_p12), 1, %s629_s10  }
  0x2c   : > { %s385_s1 = sshll.u32 (!%p750_p12), %s792_s7, 4  ;;  %s167_s19 = scalar_lea.sflag (!%p750_p12), [#allocation3], %s792_s7 }
  0x2d   : > { %s170_s14 = scalar_lea.vmem (!%p750_p12), [#allocation2], %s385_s1 }
  0x30   : > { %612 = dma.done.wait (%p733_p7), %s167_s19, 256  }
  0x31   : > { %614 = vsyncadd (%p733_p7), %s167_s19, 4294967040 }
  0x32   : > { %616 = dma.done.wait (%p723_p3), [#allocation6], 32  }
  0x33   : > { %618 = vsyncadd (%p723_p3), [#allocation6], 4294967264  ;;  %v200_v0 = vld [vmem:[%s170_s14] sm:$0xff]  ;;  %v201_v1 = vld [vmem:[%s170_s14 + $0x8] sm:$0xff]  ;;  %v202_v2 = vlaneseq  ;;  %s389_s2 = sshll.u32 %s637_s12, 1  ;;  %s390_s16 = sshll.u32 %s641_s13, 2 }
  0x34   : > { %205 = vadd.xlane.f32.xlu0 %v200_v0  ;;  %v199_v24 = vld [vmem:[#allocation5] sm:$0x3]  ;;  %s269_s20 = sadd.s32 %s390_s16, %s389_s2  ;;  %s892_s23 = sld [smem:[#allocation18_spill]] }
  0x35   : > { %v806_v3 = vand.u32 127, %v202_v2  ;;  %v247_v29 = vperm.slane %v199_v24, 0  ;;  %v250_v33 = vperm.slane %v199_v24, 1  ;;  %s391_s22 = sshll.u32 %s269_s20, 3  ;;  %s196_s28 = scalar_lea.vmem [#allocation7], %s385_s1 }
  0x36   : > { %s272_s4 = sshll.u32 %s196_s28, 4  ;;  %s258_s8 = scalar_lea.sflag [#allocation4], %s792_s7  ;;  %s273_s4 = int_to_ptr.vmem [resolvable:$true] %s272_s4 }
  0x37   : > { %vm204_vm0 = vcmp.lt.s32.totalorder %v806_v3, 32 }
  0x3a   : > { %s271_s24 = scalar_lea.hbm %s892_s23, %s391_s22  ;;  %s571_s26 = scalar_lea.hbm %s892_s23, 64 }
  0x3b   : > { %s274_s6 = sshll.u32 %s271_s24, 4  ;;  %s275_s6 = int_to_ptr.hbm [resolvable:$true] %s274_s6 }
  0x3c   : > { %207 = vadd.xlane.f32.xlu0 %v201_v1  ;;  %s565_s17 = sshra.s32 %s275_s6, 4  ;;  %s566_s17 = int_to_ptr.hbm [resolvable:$true] %s565_s17 }
  0x3d   : > { %s567_s18 = scalar_lea.hbm %s566_s17, 16  ;;  %p572_p11 = scmp.lt.s32.totalorder %s566_s17, %s892_s23 }
  0x3e   : > { %p568_p3 = scmp.ne.s32.totalorder %s566_s17, %s567_s18  ;;  %p573_p12 = scmp.lt.s32.totalorder %s571_s26, %s567_s18 }
  0x40   : > { %p569_p7 = pnand %p568_p3, %p737_p8  ;;  %p574_p13 = por %p573_p12, %p572_p11 }
  0x42   : > { %p570_p10 = pneg %p569_p7 }
  0x44   : > { %p575_p0 = pnand %p574_p13, %p570_p10 }
  0xa7   : > { %v206_v4 = vpop.xlane.xlu0 %205 }
  0xa8   : > { %v209_v5 = vmul.f32 0.03125, %v206_v4 }
  0xaa   : > { %v211_v6 = vsub.f32 %v200_v0, %v209_v5 }
  0xac   : > { %v213_v7 = vsel %vm204_vm0, %v211_v6, 0.0 }
  0xad   : > { %v215_v8 = vmul.f32 %v213_v7, %v213_v7 }
  0xaf   : > { %217 = vadd.xlane.f32.xlu1 %v215_v8  ;;  %v208_v9 = vpop.xlane.xlu0 %207 }
  0xb0   : > { %v210_v10 = vmul.f32 0.03125, %v208_v9 }
  0xb2   : > { %v212_v11 = vsub.f32 %v201_v1, %v210_v10 }
  0xb4   : > { %v214_v12 = vsel %vm204_vm0, %v212_v11, 0.0 }
  0xb5   : > { %v216_v13 = vmul.f32 %v214_v12, %v214_v12 }
  0xb7   : > { %219 = vadd.xlane.f32.xlu1 %v216_v13 }
 0x122   : > { %v218_v14 = vpop.xlane.xlu1 %217 }
 0x123   : > { %v221_v15 = vmul.f32 0.03125, %v218_v14 }
 0x125   : > { %v223_v16 = vadd.f32 1e-05, %v221_v15 }
 0x127   : > { %487 = vrsqrt.f32 %v223_v16  ;;  %vm231_vm2 = vweird.f32 %v223_v16 }
 0x12a   : > { %v220_v17 = vpop.xlane.xlu1 %219 }
 0x12b   : > { %v222_v18 = vmul.f32 0.03125, %v220_v17 }
 0x12d   : > { %v488_v19 = vpop.eup %487  ;;  %v224_v20 = vadd.f32 1e-05, %v222_v18 }
 0x12e   : > { %v226_v21 = vmul.f32 %v488_v19, %v223_v16  ;;  %vm232_vm1 = vweird.f32 %v488_v19 }
 0x12f   : > { %489 = vrsqrt.f32 %v224_v20  ;;  %vm233_vm3 = vmor %vm231_vm2, %vm232_vm1  ;;  %vm241_vm5 = vweird.f32 %v224_v20 }
 0x130   : > { %v227_v22 = vmul.f32 %v488_v19, %v226_v21 }
 0x132   : > { %v228_v23 = vmul.f32 0.5, %v227_v22 }
 0x134   : > { %v229_v25 = vsub.f32 1.5, %v228_v23 }
 0x135   : > { %v490_v26 = vpop.eup %489 }
 0x136   : > { %v230_v27 = vmul.f32 %v488_v19, %v229_v25  ;;  %v236_v28 = vmul.f32 %v490_v26, %v224_v20  ;;  %vm242_vm4 = vweird.f32 %v490_v26 }
 0x137   : > { %vm243_vm6 = vmor %vm241_vm5, %vm242_vm4 }
 0x138   : > { %v234_v30 = vsel %vm233_vm3, %v488_v19, %v230_v27  ;;  %v237_v31 = vmul.f32 %v490_v26, %v236_v28 }
 0x139   : > { %v245_v32 = vmul.f32 %v234_v30, %v213_v7 }
 0x13a   : > { %v238_v34 = vmul.f32 0.5, %v237_v31 }
 0x13b   : > { %v248_v35 = vmul.f32 %v247_v29, %v245_v32 }
 0x13c   : > { %v239_v36 = vsub.f32 1.5, %v238_v34 }
 0x13d   : > { %v251_v37 = vadd.f32 %v250_v33, %v248_v35 }
 0x13e   : > { %v240_v38 = vmul.f32 %v490_v26, %v239_v36 }
 0x13f   : > { %v253_v39 = vsel %vm204_vm0, %v251_v37, 0.0 }
 0x140   : > { %v244_v40 = vsel %vm243_vm6, %v490_v26, %v240_v38  ;;  %255 = vst [vmem:[%s196_s28] sm:$0xff] %v253_v39 }
 0x141   : > { %v246_v41 = vmul.f32 %v244_v40, %v214_v12 }
 0x143   : > { %v249_v42 = vmul.f32 %v247_v29, %v246_v41 }
 0x145   : > { %v252_v43 = vadd.f32 %v250_v33, %v249_v42 }
 0x147   : > { %v254_v44 = vsel %vm204_vm0, %v252_v43, 0.0 }
 0x148   : > { %256 = vst [vmem:[%s196_s28 + $0x8] sm:$0xff] %v254_v44 }
 0x149   : > { %578 = shalt.err (!%p575_p0)
}
 0x14a   : > { %s658_s30 = smov 128   ;;  %s659_s7 = smov 8  }
 0x14b   : > { %400 = dma.vmem_to_hbm [thread:$0]  (%p737_p8), %s273_s4, 256, %s275_s6, %s258_s8, %s658_s30, %s658_s30, %s659_s7  }
 0x14c PF: > { %s894_s1 = sld [smem:[#allocation13_spill]] }
 0x14d   : > { %s895_s19 = sld [smem:[#allocation11_spill]] }
 0x152   : > { %p417_p1 = scmp.ge.s32.totalorder %s894_s1, 2 }
 0x153   : > { %s289_s2 = sand.u32 1, %s895_s19  }
 0x154   : > { %p411_p2 = pnand %p417_p1, %p741_p9  ;;  %s290_s16 = scalar_lea.sflag [#allocation4], %s289_s2 }
 0x156   : > { %p412_p4 = pneg %p411_p2 }
 0x158   : > { %620 = dma.done.wait (%p412_p4), %s290_s16, 256  }
 0x159   : > { %622 = vsyncadd (%p412_p4), %s290_s16, 4294967040  ;;  %s19_s16 = sadd.s32 1, %s894_s1   ;;  %s897_s20 = smov %s785_s9 }
 0x15a   : > { %p16_p6 = scmp.ge.s32.totalorder %s19_s16, 6   ;;  %s898_s12 = sld [smem:[#allocation12_spill]] }
 0x15b   : > { %s899_s14 = sld [smem:[#allocation16_spill]]  ;;  %s900_s9 = smov %s629_s10 }
 0x15c   : > { %s901_s10 = smov %s633_s11  ;;  %s902_s11 = smov %s897_s20 }
 0x15d   : > { %s903_s13 = smov %s649_s15  ;;  %s904_s15 = smov %s910_s5 }
 0x15e   :  { %18 = sbr.rel (!%p16_p6) target bundleno = 11 (0xb), region = 77 }
 0x163   :  { %296 = vsyncpa [#allocation3], 1 }
 0x164   :  { %298 = vsyncpa [#allocation3 + $0x1], 1 }
 0x165   :  { %299 = vsyncpa [#allocation6], 1 }
 0x166   :  { %300 = vsyncpa [#allocation4], 1 }
 0x167   :  { %302 = vsyncpa [#allocation4 + $0x1], 1 }

</bundles_post_ra>
